<compile_context>
chip_gen: v7x
topology: tpu7x:2x2x1
jax: 0.10.0
libtpu: 0.0.40
codegen_flags: <defaults>
</compile_context>

<pallas_src>
import jax
import jax.numpy as jnp
from jax.experimental import pallas as pl
from jax.experimental.pallas import tpu as pltpu  # noqa: F401  (TPU backend)

BN_EPS = 1e-5


def _full_spec(shape):
    # Whole-array block (block_shape == array shape), gridless call.
    return pl.BlockSpec(shape, lambda: tuple(0 for _ in shape))


# ---------------------------------------------------------------------------
# Fused forward kernel
# ---------------------------------------------------------------------------
def _linear_relu_bn(h, wt, b, g, beta):
    # Linear: x @ W^T + b on the MXU (wt is pre-transposed, [in, out]).
    h = jnp.dot(h, wt, preferred_element_type=jnp.float32) + b
    h = jnp.maximum(h, 0.0)                                  # ReLU
    # BatchNorm1d, training mode: batch mean, biased variance, eps=1e-5.
    mean = jnp.mean(h, axis=0, keepdims=True)
    diff = h - mean
    var = jnp.mean(diff * diff, axis=0, keepdims=True)
    scale = g * jax.lax.rsqrt(var + BN_EPS)                  # (1, N) row
    shift = beta - mean * scale                              # (1, N) row
    return h * scale + shift                                 # one FMA / element


def make_vae_kernel(n_enc, n_dec, latent_dim):
    """Build the fused kernel for a static layer configuration."""

    def kernel(*refs):
        # inputs : x, eps,
        #          [wt, b, gamma, beta] * n_enc,
        #          wt_latent_packed, b_latent_packed,
        #          [wt, b, gamma, beta] * n_dec
        # outputs: out, z, ave, log_dev
        n_in = 2 + 4 * n_enc + 2 + 4 * n_dec
        in_refs = refs[:n_in]
        out_ref, z_ref, ave_ref, logdev_ref = refs[n_in:]

        x_ref, eps_ref = in_refs[0], in_refs[1]
        p = 2

        h = x_ref[...]

        # ---- encoder blocks: Linear + ReLU + BatchNorm1d -----------------
        for _ in range(n_enc):
            h = _linear_relu_bn(h, in_refs[p][...], in_refs[p + 1][...],
                                in_refs[p + 2][...], in_refs[p + 3][...])
            p += 4

        # ---- latent heads packed into a single matmul --------------------
        wt_lat, b_lat = in_refs[p][...], in_refs[p + 1][...]
        p += 2
        packed = jnp.dot(h, wt_lat, preferred_element_type=jnp.float32) + b_lat
        ave = packed[:, :latent_dim]
        log_dev = packed[:, latent_dim:]

        # ---- reparameterization sampling: z = eps * exp(0.5*log_dev) + ave
        z = eps_ref[...] * jnp.exp(0.5 * log_dev) + ave

        # ---- decoder blocks: Linear + ReLU + BatchNorm1d ------------------
        h = z
        for _ in range(n_dec):
            h = _linear_relu_bn(h, in_refs[p][...], in_refs[p + 1][...],
                                in_refs[p + 2][...], in_refs[p + 3][...])
            p += 4

        out_ref[...] = h
        z_ref[...] = z
        ave_ref[...] = ave
        logdev_ref[...] = log_dev

    return kernel


# ---------------------------------------------------------------------------
# Parameter construction (deterministic, PyTorch-style fan-in scaling).
# Weights are stored PRE-TRANSPOSED ([in, out]) and bias/gamma/beta as (1, N)
# rows so the forward pass does zero host-side reshaping.
# ---------------------------------------------------------------------------
def init_linear(key, in_f, out_f):
    kw, kb = jax.random.split(key)
    bound = 1.0 / jnp.sqrt(jnp.float32(in_f))
    w = jax.random.uniform(kw, (out_f, in_f), jnp.float32, -bound, bound)
    b = jax.random.uniform(kb, (out_f,), jnp.float32, -bound, bound)
    return w, b


def build_vae_params(key, encoder_hidden_dims, decoder_hidden_dims):
    params = {"encoder": [], "decoder": []}

    # encoder blocks: Linear(enc[i], enc[i+1]) + ReLU + BN
    for i in range(len(encoder_hidden_dims) - 2):
        key, sk = jax.random.split(key)
        w, b = init_linear(sk, encoder_hidden_dims[i], encoder_hidden_dims[i + 1])
        n = encoder_hidden_dims[i + 1]
        params["encoder"].append(
            (w.T, b.reshape(1, -1),
             jnp.ones((1, n), jnp.float32), jnp.zeros((1, n), jnp.float32)))

    # latent heads packed: [W_ave^T | W_dev^T] -> (hidden, 2*latent)
    key, k_ave, k_dev = jax.random.split(key, 3)
    w_ave, b_ave = init_linear(k_ave, encoder_hidden_dims[-2], encoder_hidden_dims[-1])
    w_dev, b_dev = init_linear(k_dev, encoder_hidden_dims[-2], encoder_hidden_dims[-1])
    params["latent"] = (jnp.concatenate([w_ave.T, w_dev.T], axis=1),
                        jnp.concatenate([b_ave, b_dev]).reshape(1, -1))

    # decoder blocks: Linear + ReLU + BN
    prev = encoder_hidden_dims[-1]
    for i in range(len(decoder_hidden_dims)):
        key, sk = jax.random.split(key)
        w, b = init_linear(sk, prev, decoder_hidden_dims[i])
        n = decoder_hidden_dims[i]
        params["decoder"].append(
            (w.T, b.reshape(1, -1),
             jnp.ones((1, n), jnp.float32), jnp.zeros((1, n), jnp.float32)))
        prev = decoder_hidden_dims[i]
    return params


# ---------------------------------------------------------------------------
# Forward pass: exactly one pallas_call.
# ---------------------------------------------------------------------------
def vae_forward(params, x, eps):
    n_enc = len(params["encoder"])
    n_dec = len(params["decoder"])
    latent_dim = params["latent"][0].shape[1] // 2   # static (from shape)
    out_dim = params["decoder"][-1][0].shape[1]      # static (from shape)
    B = x.shape[0]

    inputs = [x, eps]
    for blk in params["encoder"]:
        inputs.extend(blk)
    inputs.extend(params["latent"])
    for blk in params["decoder"]:
        inputs.extend(blk)

    out_shapes = (jax.ShapeDtypeStruct((B, out_dim), jnp.float32),
                  jax.ShapeDtypeStruct((B, latent_dim), jnp.float32),
                  jax.ShapeDtypeStruct((B, latent_dim), jnp.float32),
                  jax.ShapeDtypeStruct((B, latent_dim), jnp.float32))

    return pl.pallas_call(
        make_vae_kernel(n_enc, n_dec, latent_dim),
        out_shape=out_shapes,
        in_specs=[_full_spec(a.shape) for a in inputs],
        out_specs=tuple(_full_spec(s.shape) for s in out_shapes),
    )(*inputs)


# TODO(synk): BatchNorm running_mean/running_var buffers are not updated
# (forward uses training-mode batch statistics only, matching module.forward()).

if __name__ == "__main__":
    encoder_hidden_dims = [16, 32, 32, 8]   # last entry = latent dim
    decoder_hidden_dims = [32, 32, 16]
    batch = 8

    key = jax.random.PRNGKey(0)
    kp, kx, ke = jax.random.split(key, 3)

    params = build_vae_params(kp, encoder_hidden_dims, decoder_hidden_dims)
    x = jax.random.normal(kx, (batch, encoder_hidden_dims[0]), jnp.float32)
    eps = jax.random.normal(ke, (batch, encoder_hidden_dims[-1]), jnp.float32)

    fwd = jax.jit(vae_forward)
    out, z, ave, log_dev = fwd(params, x, eps)
    jax.block_until_ready((out, z, ave, log_dev))

    assert out.shape == (batch, decoder_hidden_dims[-1])
    assert z.shape == (batch, encoder_hidden_dims[-1])
    assert ave.shape == (batch, encoder_hidden_dims[-1])
    assert log_dev.shape == (batch, encoder_hidden_dims[-1])
    assert bool(jnp.all(jnp.isfinite(out)))
    assert bool(jnp.all(jnp.isfinite(z)))
    print("KERNEL_OK")
</pallas_src>

<mosaic_0001>
module attributes {stable_mosaic.version = 11 : i64} {
  func.func @kernel(%arg0: memref<8x16xf32, #tpu.memory_space<vmem>>, %arg1: memref<8x8xf32, #tpu.memory_space<vmem>>, %arg2: memref<16x32xf32, #tpu.memory_space<vmem>>, %arg3: memref<1x32xf32, #tpu.memory_space<vmem>>, %arg4: memref<1x32xf32, #tpu.memory_space<vmem>>, %arg5: memref<1x32xf32, #tpu.memory_space<vmem>>, %arg6: memref<32x32xf32, #tpu.memory_space<vmem>>, %arg7: memref<1x32xf32, #tpu.memory_space<vmem>>, %arg8: memref<1x32xf32, #tpu.memory_space<vmem>>, %arg9: memref<1x32xf32, #tpu.memory_space<vmem>>, %arg10: memref<32x16xf32, #tpu.memory_space<vmem>>, %arg11: memref<1x16xf32, #tpu.memory_space<vmem>>, %arg12: memref<8x32xf32, #tpu.memory_space<vmem>>, %arg13: memref<1x32xf32, #tpu.memory_space<vmem>>, %arg14: memref<1x32xf32, #tpu.memory_space<vmem>>, %arg15: memref<1x32xf32, #tpu.memory_space<vmem>>, %arg16: memref<32x32xf32, #tpu.memory_space<vmem>>, %arg17: memref<1x32xf32, #tpu.memory_space<vmem>>, %arg18: memref<1x32xf32, #tpu.memory_space<vmem>>, %arg19: memref<1x32xf32, #tpu.memory_space<vmem>>, %arg20: memref<32x16xf32, #tpu.memory_space<vmem>>, %arg21: memref<1x16xf32, #tpu.memory_space<vmem>>, %arg22: memref<1x16xf32, #tpu.memory_space<vmem>>, %arg23: memref<1x16xf32, #tpu.memory_space<vmem>>, %arg24: memref<8x16xf32, #tpu.memory_space<vmem>>, %arg25: memref<8x8xf32, #tpu.memory_space<vmem>>, %arg26: memref<8x8xf32, #tpu.memory_space<vmem>>, %arg27: memref<8x8xf32, #tpu.memory_space<vmem>>) attributes {dimension_semantics = [], scalar_prefetch = 0 : i64, scratch_operands = 0 : i64, tpu.core_type = #tpu.core_type<tc>} {
    %c0 = arith.constant 0 : index
    %c0_0 = arith.constant 0 : index
    %0 = vector.load %arg0[%c0, %c0_0] : memref<8x16xf32, #tpu.memory_space<vmem>>, vector<8x16xf32>
    %c0_1 = arith.constant 0 : index
    %c0_2 = arith.constant 0 : index
    %1 = vector.load %arg2[%c0_1, %c0_2] : memref<16x32xf32, #tpu.memory_space<vmem>>, vector<16x32xf32>
    %c0_3 = arith.constant 0 : index
    %c0_4 = arith.constant 0 : index
    %2 = vector.load %arg3[%c0_3, %c0_4] : memref<1x32xf32, #tpu.memory_space<vmem>>, vector<1x32xf32>
    %c0_5 = arith.constant 0 : index
    %c0_6 = arith.constant 0 : index
    %3 = vector.load %arg4[%c0_5, %c0_6] : memref<1x32xf32, #tpu.memory_space<vmem>>, vector<1x32xf32>
    %c0_7 = arith.constant 0 : index
    %c0_8 = arith.constant 0 : index
    %4 = vector.load %arg5[%c0_7, %c0_8] : memref<1x32xf32, #tpu.memory_space<vmem>>, vector<1x32xf32>
    %cst = arith.constant dense<0.000000e+00> : vector<8x32xf32>
    %5 = tpu.matmul %0, %1, %cst {dimension_numbers = #tpu.dot_dimension_numbers<[1], [0], [0], [1], [0, 0, 1, 1], [], []>} : vector<8x16xf32>, vector<16x32xf32>, vector<8x32xf32> -> vector<8x32xf32>
    %6 = vector.broadcast %2 : vector<1x32xf32> to vector<8x32xf32>
    %7 = arith.addf %5, %6 : vector<8x32xf32>
    %cst_9 = arith.constant 0.000000e+00 : f32
    %8 = vector.broadcast %cst_9 : f32 to vector<8x32xf32>
    %9 = arith.maximumf %7, %8 : vector<8x32xf32>
    %cst_10 = arith.constant dense<0.000000e+00> : vector<32xf32>
    %10 = vector.multi_reduction <add>, %9, %cst_10 [0] : vector<8x32xf32> to vector<32xf32>
    %11 = vector.shape_cast %10 : vector<32xf32> to vector<1x32xf32>
    %cst_11 = arith.constant 8.000000e+00 : f32
    %12 = vector.broadcast %cst_11 : f32 to vector<1x32xf32>
    %13 = arith.divf %11, %12 : vector<1x32xf32>
    %14 = vector.broadcast %13 : vector<1x32xf32> to vector<8x32xf32>
    %15 = arith.subf %9, %14 : vector<8x32xf32>
    %16 = arith.mulf %15, %15 : vector<8x32xf32>
    %cst_12 = arith.constant dense<0.000000e+00> : vector<32xf32>
    %17 = vector.multi_reduction <add>, %16, %cst_12 [0] : vector<8x32xf32> to vector<32xf32>
    %18 = vector.shape_cast %17 : vector<32xf32> to vector<1x32xf32>
    %cst_13 = arith.constant 8.000000e+00 : f32
    %19 = vector.broadcast %cst_13 : f32 to vector<1x32xf32>
    %20 = arith.divf %18, %19 : vector<1x32xf32>
    %cst_14 = arith.constant 9.99999974E-6 : f32
    %21 = vector.broadcast %cst_14 : f32 to vector<1x32xf32>
    %22 = arith.addf %20, %21 : vector<1x32xf32>
    %23 = math.rsqrt %22 : vector<1x32xf32>
    %24 = arith.mulf %3, %23 : vector<1x32xf32>
    %25 = arith.mulf %13, %24 : vector<1x32xf32>
    %26 = arith.subf %4, %25 : vector<1x32xf32>
    %27 = vector.broadcast %24 : vector<1x32xf32> to vector<8x32xf32>
    %28 = arith.mulf %9, %27 : vector<8x32xf32>
    %29 = vector.broadcast %26 : vector<1x32xf32> to vector<8x32xf32>
    %30 = arith.addf %28, %29 : vector<8x32xf32>
    %c0_15 = arith.constant 0 : index
    %c0_16 = arith.constant 0 : index
    %31 = vector.load %arg6[%c0_15, %c0_16] : memref<32x32xf32, #tpu.memory_space<vmem>>, vector<32x32xf32>
    %c0_17 = arith.constant 0 : index
    %c0_18 = arith.constant 0 : index
    %32 = vector.load %arg7[%c0_17, %c0_18] : memref<1x32xf32, #tpu.memory_space<vmem>>, vector<1x32xf32>
    %c0_19 = arith.constant 0 : index
    %c0_20 = arith.constant 0 : index
    %33 = vector.load %arg8[%c0_19, %c0_20] : memref<1x32xf32, #tpu.memory_space<vmem>>, vector<1x32xf32>
    %c0_21 = arith.constant 0 : index
    %c0_22 = arith.constant 0 : index
    %34 = vector.load %arg9[%c0_21, %c0_22] : memref<1x32xf32, #tpu.memory_space<vmem>>, vector<1x32xf32>
    %cst_23 = arith.constant dense<0.000000e+00> : vector<8x32xf32>
    %35 = tpu.matmul %30, %31, %cst_23 {dimension_numbers = #tpu.dot_dimension_numbers<[1], [0], [0], [1], [0, 0, 1, 1], [], []>} : vector<8x32xf32>, vector<32x32xf32>, vector<8x32xf32> -> vector<8x32xf32>
    %36 = vector.broadcast %32 : vector<1x32xf32> to vector<8x32xf32>
    %37 = arith.addf %35, %36 : vector<8x32xf32>
    %cst_24 = arith.constant 0.000000e+00 : f32
    %38 = vector.broadcast %cst_24 : f32 to vector<8x32xf32>
    %39 = arith.maximumf %37, %38 : vector<8x32xf32>
    %cst_25 = arith.constant dense<0.000000e+00> : vector<32xf32>
    %40 = vector.multi_reduction <add>, %39, %cst_25 [0] : vector<8x32xf32> to vector<32xf32>
    %41 = vector.shape_cast %40 : vector<32xf32> to vector<1x32xf32>
    %cst_26 = arith.constant 8.000000e+00 : f32
    %42 = vector.broadcast %cst_26 : f32 to vector<1x32xf32>
    %43 = arith.divf %41, %42 : vector<1x32xf32>
    %44 = vector.broadcast %43 : vector<1x32xf32> to vector<8x32xf32>
    %45 = arith.subf %39, %44 : vector<8x32xf32>
    %46 = arith.mulf %45, %45 : vector<8x32xf32>
    %cst_27 = arith.constant dense<0.000000e+00> : vector<32xf32>
    %47 = vector.multi_reduction <add>, %46, %cst_27 [0] : vector<8x32xf32> to vector<32xf32>
    %48 = vector.shape_cast %47 : vector<32xf32> to vector<1x32xf32>
    %cst_28 = arith.constant 8.000000e+00 : f32
    %49 = vector.broadcast %cst_28 : f32 to vector<1x32xf32>
    %50 = arith.divf %48, %49 : vector<1x32xf32>
    %cst_29 = arith.constant 9.99999974E-6 : f32
    %51 = vector.broadcast %cst_29 : f32 to vector<1x32xf32>
    %52 = arith.addf %50, %51 : vector<1x32xf32>
    %53 = math.rsqrt %52 : vector<1x32xf32>
    %54 = arith.mulf %33, %53 : vector<1x32xf32>
    %55 = arith.mulf %43, %54 : vector<1x32xf32>
    %56 = arith.subf %34, %55 : vector<1x32xf32>
    %57 = vector.broadcast %54 : vector<1x32xf32> to vector<8x32xf32>
    %58 = arith.mulf %39, %57 : vector<8x32xf32>
    %59 = vector.broadcast %56 : vector<1x32xf32> to vector<8x32xf32>
    %60 = arith.addf %58, %59 : vector<8x32xf32>
    %c0_30 = arith.constant 0 : index
    %c0_31 = arith.constant 0 : index
    %61 = vector.load %arg10[%c0_30, %c0_31] : memref<32x16xf32, #tpu.memory_space<vmem>>, vector<32x16xf32>
    %c0_32 = arith.constant 0 : index
    %c0_33 = arith.constant 0 : index
    %62 = vector.load %arg11[%c0_32, %c0_33] : memref<1x16xf32, #tpu.memory_space<vmem>>, vector<1x16xf32>
    %cst_34 = arith.constant dense<0.000000e+00> : vector<8x16xf32>
    %63 = tpu.matmul %60, %61, %cst_34 {dimension_numbers = #tpu.dot_dimension_numbers<[1], [0], [0], [1], [0, 0, 1, 1], [], []>} : vector<8x32xf32>, vector<32x16xf32>, vector<8x16xf32> -> vector<8x16xf32>
    %64 = vector.broadcast %62 : vector<1x16xf32> to vector<8x16xf32>
    %65 = arith.addf %63, %64 : vector<8x16xf32>
    %66 = vector.extract_strided_slice %65 {offsets = [0, 0], sizes = [8, 8], strides = [1, 1]} : vector<8x16xf32> to vector<8x8xf32>
    %67 = vector.extract_strided_slice %65 {offsets = [0, 8], sizes = [8, 8], strides = [1, 1]} : vector<8x16xf32> to vector<8x8xf32>
    %c0_35 = arith.constant 0 : index
    %c0_36 = arith.constant 0 : index
    %68 = vector.load %arg1[%c0_35, %c0_36] : memref<8x8xf32, #tpu.memory_space<vmem>>, vector<8x8xf32>
    %cst_37 = arith.constant 5.000000e-01 : f32
    %69 = vector.broadcast %cst_37 : f32 to vector<8x8xf32>
    %70 = arith.mulf %69, %67 : vector<8x8xf32>
    %71 = math.exp %70 : vector<8x8xf32>
    %72 = arith.mulf %68, %71 : vector<8x8xf32>
    %73 = arith.addf %72, %66 : vector<8x8xf32>
    %c0_38 = arith.constant 0 : index
    %c0_39 = arith.constant 0 : index
    %74 = vector.load %arg12[%c0_38, %c0_39] : memref<8x32xf32, #tpu.memory_space<vmem>>, vector<8x32xf32>
    %c0_40 = arith.constant 0 : index
    %c0_41 = arith.constant 0 : index
    %75 = vector.load %arg13[%c0_40, %c0_41] : memref<1x32xf32, #tpu.memory_space<vmem>>, vector<1x32xf32>
    %c0_42 = arith.constant 0 : index
    %c0_43 = arith.constant 0 : index
    %76 = vector.load %arg14[%c0_42, %c0_43] : memref<1x32xf32, #tpu.memory_space<vmem>>, vector<1x32xf32>
    %c0_44 = arith.constant 0 : index
    %c0_45 = arith.constant 0 : index
    %77 = vector.load %arg15[%c0_44, %c0_45] : memref<1x32xf32, #tpu.memory_space<vmem>>, vector<1x32xf32>
    %cst_46 = arith.constant dense<0.000000e+00> : vector<8x32xf32>
    %78 = tpu.matmul %73, %74, %cst_46 {dimension_numbers = #tpu.dot_dimension_numbers<[1], [0], [0], [1], [0, 0, 1, 1], [], []>} : vector<8x8xf32>, vector<8x32xf32>, vector<8x32xf32> -> vector<8x32xf32>
    %79 = vector.broadcast %75 : vector<1x32xf32> to vector<8x32xf32>
    %80 = arith.addf %78, %79 : vector<8x32xf32>
    %cst_47 = arith.constant 0.000000e+00 : f32
    %81 = vector.broadcast %cst_47 : f32 to vector<8x32xf32>
    %82 = arith.maximumf %80, %81 : vector<8x32xf32>
    %cst_48 = arith.constant dense<0.000000e+00> : vector<32xf32>
    %83 = vector.multi_reduction <add>, %82, %cst_48 [0] : vector<8x32xf32> to vector<32xf32>
    %84 = vector.shape_cast %83 : vector<32xf32> to vector<1x32xf32>
    %cst_49 = arith.constant 8.000000e+00 : f32
    %85 = vector.broadcast %cst_49 : f32 to vector<1x32xf32>
    %86 = arith.divf %84, %85 : vector<1x32xf32>
    %87 = vector.broadcast %86 : vector<1x32xf32> to vector<8x32xf32>
    %88 = arith.subf %82, %87 : vector<8x32xf32>
    %89 = arith.mulf %88, %88 : vector<8x32xf32>
    %cst_50 = arith.constant dense<0.000000e+00> : vector<32xf32>
    %90 = vector.multi_reduction <add>, %89, %cst_50 [0] : vector<8x32xf32> to vector<32xf32>
    %91 = vector.shape_cast %90 : vector<32xf32> to vector<1x32xf32>
    %cst_51 = arith.constant 8.000000e+00 : f32
    %92 = vector.broadcast %cst_51 : f32 to vector<1x32xf32>
    %93 = arith.divf %91, %92 : vector<1x32xf32>
    %cst_52 = arith.constant 9.99999974E-6 : f32
    %94 = vector.broadcast %cst_52 : f32 to vector<1x32xf32>
    %95 = arith.addf %93, %94 : vector<1x32xf32>
    %96 = math.rsqrt %95 : vector<1x32xf32>
    %97 = arith.mulf %76, %96 : vector<1x32xf32>
    %98 = arith.mulf %86, %97 : vector<1x32xf32>
    %99 = arith.subf %77, %98 : vector<1x32xf32>
    %100 = vector.broadcast %97 : vector<1x32xf32> to vector<8x32xf32>
    %101 = arith.mulf %82, %100 : vector<8x32xf32>
    %102 = vector.broadcast %99 : vector<1x32xf32> to vector<8x32xf32>
    %103 = arith.addf %101, %102 : vector<8x32xf32>
    %c0_53 = arith.constant 0 : index
    %c0_54 = arith.constant 0 : index
    %104 = vector.load %arg16[%c0_53, %c0_54] : memref<32x32xf32, #tpu.memory_space<vmem>>, vector<32x32xf32>
    %c0_55 = arith.constant 0 : index
    %c0_56 = arith.constant 0 : index
    %105 = vector.load %arg17[%c0_55, %c0_56] : memref<1x32xf32, #tpu.memory_space<vmem>>, vector<1x32xf32>
    %c0_57 = arith.constant 0 : index
    %c0_58 = arith.constant 0 : index
    %106 = vector.load %arg18[%c0_57, %c0_58] : memref<1x32xf32, #tpu.memory_space<vmem>>, vector<1x32xf32>
    %c0_59 = arith.constant 0 : index
    %c0_60 = arith.constant 0 : index
    %107 = vector.load %arg19[%c0_59, %c0_60] : memref<1x32xf32, #tpu.memory_space<vmem>>, vector<1x32xf32>
    %cst_61 = arith.constant dense<0.000000e+00> : vector<8x32xf32>
    %108 = tpu.matmul %103, %104, %cst_61 {dimension_numbers = #tpu.dot_dimension_numbers<[1], [0], [0], [1], [0, 0, 1, 1], [], []>} : vector<8x32xf32>, vector<32x32xf32>, vector<8x32xf32> -> vector<8x32xf32>
    %109 = vector.broadcast %105 : vector<1x32xf32> to vector<8x32xf32>
    %110 = arith.addf %108, %109 : vector<8x32xf32>
    %cst_62 = arith.constant 0.000000e+00 : f32
    %111 = vector.broadcast %cst_62 : f32 to vector<8x32xf32>
    %112 = arith.maximumf %110, %111 : vector<8x32xf32>
    %cst_63 = arith.constant dense<0.000000e+00> : vector<32xf32>
    %113 = vector.multi_reduction <add>, %112, %cst_63 [0] : vector<8x32xf32> to vector<32xf32>
    %114 = vector.shape_cast %113 : vector<32xf32> to vector<1x32xf32>
    %cst_64 = arith.constant 8.000000e+00 : f32
    %115 = vector.broadcast %cst_64 : f32 to vector<1x32xf32>
    %116 = arith.divf %114, %115 : vector<1x32xf32>
    %117 = vector.broadcast %116 : vector<1x32xf32> to vector<8x32xf32>
    %118 = arith.subf %112, %117 : vector<8x32xf32>
    %119 = arith.mulf %118, %118 : vector<8x32xf32>
    %cst_65 = arith.constant dense<0.000000e+00> : vector<32xf32>
    %120 = vector.multi_reduction <add>, %119, %cst_65 [0] : vector<8x32xf32> to vector<32xf32>
    %121 = vector.shape_cast %120 : vector<32xf32> to vector<1x32xf32>
    %cst_66 = arith.constant 8.000000e+00 : f32
    %122 = vector.broadcast %cst_66 : f32 to vector<1x32xf32>
    %123 = arith.divf %121, %122 : vector<1x32xf32>
    %cst_67 = arith.constant 9.99999974E-6 : f32
    %124 = vector.broadcast %cst_67 : f32 to vector<1x32xf32>
    %125 = arith.addf %123, %124 : vector<1x32xf32>
    %126 = math.rsqrt %125 : vector<1x32xf32>
    %127 = arith.mulf %106, %126 : vector<1x32xf32>
    %128 = arith.mulf %116, %127 : vector<1x32xf32>
    %129 = arith.subf %107, %128 : vector<1x32xf32>
    %130 = vector.broadcast %127 : vector<1x32xf32> to vector<8x32xf32>
    %131 = arith.mulf %112, %130 : vector<8x32xf32>
    %132 = vector.broadcast %129 : vector<1x32xf32> to vector<8x32xf32>
    %133 = arith.addf %131, %132 : vector<8x32xf32>
    %c0_68 = arith.constant 0 : index
    %c0_69 = arith.constant 0 : index
    %134 = vector.load %arg20[%c0_68, %c0_69] : memref<32x16xf32, #tpu.memory_space<vmem>>, vector<32x16xf32>
    %c0_70 = arith.constant 0 : index
    %c0_71 = arith.constant 0 : index
    %135 = vector.load %arg21[%c0_70, %c0_71] : memref<1x16xf32, #tpu.memory_space<vmem>>, vector<1x16xf32>
    %c0_72 = arith.constant 0 : index
    %c0_73 = arith.constant 0 : index
    %136 = vector.load %arg22[%c0_72, %c0_73] : memref<1x16xf32, #tpu.memory_space<vmem>>, vector<1x16xf32>
    %c0_74 = arith.constant 0 : index
    %c0_75 = arith.constant 0 : index
    %137 = vector.load %arg23[%c0_74, %c0_75] : memref<1x16xf32, #tpu.memory_space<vmem>>, vector<1x16xf32>
    %cst_76 = arith.constant dense<0.000000e+00> : vector<8x16xf32>
    %138 = tpu.matmul %133, %134, %cst_76 {dimension_numbers = #tpu.dot_dimension_numbers<[1], [0], [0], [1], [0, 0, 1, 1], [], []>} : vector<8x32xf32>, vector<32x16xf32>, vector<8x16xf32> -> vector<8x16xf32>
    %139 = vector.broadcast %135 : vector<1x16xf32> to vector<8x16xf32>
    %140 = arith.addf %138, %139 : vector<8x16xf32>
    %cst_77 = arith.constant 0.000000e+00 : f32
    %141 = vector.broadcast %cst_77 : f32 to vector<8x16xf32>
    %142 = arith.maximumf %140, %141 : vector<8x16xf32>
    %cst_78 = arith.constant dense<0.000000e+00> : vector<16xf32>
    %143 = vector.multi_reduction <add>, %142, %cst_78 [0] : vector<8x16xf32> to vector<16xf32>
    %144 = vector.shape_cast %143 : vector<16xf32> to vector<1x16xf32>
    %cst_79 = arith.constant 8.000000e+00 : f32
    %145 = vector.broadcast %cst_79 : f32 to vector<1x16xf32>
    %146 = arith.divf %144, %145 : vector<1x16xf32>
    %147 = vector.broadcast %146 : vector<1x16xf32> to vector<8x16xf32>
    %148 = arith.subf %142, %147 : vector<8x16xf32>
    %149 = arith.mulf %148, %148 : vector<8x16xf32>
    %cst_80 = arith.constant dense<0.000000e+00> : vector<16xf32>
    %150 = vector.multi_reduction <add>, %149, %cst_80 [0] : vector<8x16xf32> to vector<16xf32>
    %151 = vector.shape_cast %150 : vector<16xf32> to vector<1x16xf32>
    %cst_81 = arith.constant 8.000000e+00 : f32
    %152 = vector.broadcast %cst_81 : f32 to vector<1x16xf32>
    %153 = arith.divf %151, %152 : vector<1x16xf32>
    %cst_82 = arith.constant 9.99999974E-6 : f32
    %154 = vector.broadcast %cst_82 : f32 to vector<1x16xf32>
    %155 = arith.addf %153, %154 : vector<1x16xf32>
    %156 = math.rsqrt %155 : vector<1x16xf32>
    %157 = arith.mulf %136, %156 : vector<1x16xf32>
    %158 = arith.mulf %146, %157 : vector<1x16xf32>
    %159 = arith.subf %137, %158 : vector<1x16xf32>
    %160 = vector.broadcast %157 : vector<1x16xf32> to vector<8x16xf32>
    %161 = arith.mulf %142, %160 : vector<8x16xf32>
    %162 = vector.broadcast %159 : vector<1x16xf32> to vector<8x16xf32>
    %163 = arith.addf %161, %162 : vector<8x16xf32>
    %c0_83 = arith.constant 0 : index
    %c0_84 = arith.constant 0 : index
    %164 = vector.load %arg24[%c0_83, %c0_84] : memref<8x16xf32, #tpu.memory_space<vmem>>, vector<8x16xf32>
    tpu.vector_store %arg24[%c0_83, %c0_84], %163 {strides = array<i32>} : memref<8x16xf32, #tpu.memory_space<vmem>>, vector<8x16xf32>,
    %c0_85 = arith.constant 0 : index
    %c0_86 = arith.constant 0 : index
    %165 = vector.load %arg25[%c0_85, %c0_86] : memref<8x8xf32, #tpu.memory_space<vmem>>, vector<8x8xf32>
    tpu.vector_store %arg25[%c0_85, %c0_86], %73 {strides = array<i32>} : memref<8x8xf32, #tpu.memory_space<vmem>>, vector<8x8xf32>,
    %c0_87 = arith.constant 0 : index
    %c0_88 = arith.constant 0 : index
    %166 = vector.load %arg26[%c0_87, %c0_88] : memref<8x8xf32, #tpu.memory_space<vmem>>, vector<8x8xf32>
    tpu.vector_store %arg26[%c0_87, %c0_88], %66 {strides = array<i32>} : memref<8x8xf32, #tpu.memory_space<vmem>>, vector<8x8xf32>,
    %c0_89 = arith.constant 0 : index
    %c0_90 = arith.constant 0 : index
    %167 = vector.load %arg27[%c0_89, %c0_90] : memref<8x8xf32, #tpu.memory_space<vmem>>, vector<8x8xf32>
    tpu.vector_store %arg27[%c0_89, %c0_90], %67 {strides = array<i32>} : memref<8x8xf32, #tpu.memory_space<vmem>>, vector<8x8xf32>,
    return
  }
}

</mosaic_0001>

<bundles_post_ra>
// kernel: vae_forward.1
= control target key start
LH: loop header
LB: loop body
LE: loop exit
PB: predicated region body
PF: predicated region fallthrough
CT: control target
= control target key end

     0   :  { %s1872_s0 = inlined_call_operand.vmem [shape: f32[8,16], index: 0, kind: input, shape index: {}]   ;;  %s1873_s1 = inlined_call_operand.vmem [shape: f32[8,8], index: 1, kind: input, shape index: {}]   ;;  %s1874_s2 = inlined_call_operand.vmem [shape: f32[16,32], index: 2, kind: input, shape index: {}]   ;;  %s1875_s3 = inlined_call_operand.vmem [shape: f32[1,32], index: 3, kind: input, shape index: {}]   ;;  %s1876_s4 = inlined_call_operand.vmem [shape: f32[1,32], index: 4, kind: input, shape index: {}]   ;;  %s1877_s5 = inlined_call_operand.vmem [shape: f32[1,32], index: 5, kind: input, shape index: {}]   ;;  %s1878_s6 = inlined_call_operand.vmem [shape: f32[32,32], index: 6, kind: input, shape index: {}]   ;;  %s1879_s7 = inlined_call_operand.vmem [shape: f32[1,32], index: 7, kind: input, shape index: {}]   ;;  %s1880_s8 = inlined_call_operand.vmem [shape: f32[1,32], index: 8, kind: input, shape index: {}]   ;;  %s1881_s9 = inlined_call_operand.vmem [shape: f32[1,32], index: 9, kind: input, shape index: {}]   ;;  %s1882_s10 = inlined_call_operand.vmem [shape: f32[32,16], index: 10, kind: input, shape index: {}]   ;;  %s1883_s11 = inlined_call_operand.vmem [shape: f32[1,16], index: 11, kind: input, shape index: {}]   ;;  %s1884_s12 = inlined_call_operand.hbm [shape: f32[8,32], index: 12, kind: input, shape index: {}]   ;;  %s1885_s13 = inlined_call_operand.hbm [shape: f32[1,32], index: 13, kind: input, shape index: {}]   ;;  %s1886_s14 = inlined_call_operand.hbm [shape: f32[1,32], index: 14, kind: input, shape index: {}]   ;;  %s1887_s15 = inlined_call_operand.hbm [shape: f32[1,32], index: 15, kind: input, shape index: {}]   ;;  %s1888_s16 = inlined_call_operand.vmem [shape: f32[32,32], index: 16, kind: input, shape index: {}]   ;;  %s1889_s17 = inlined_call_operand.hbm [shape: f32[1,32], index: 17, kind: input, shape index: {}]   ;;  %s1890_s18 = inlined_call_operand.hbm [shape: f32[1,32], index: 18, kind: input, shape index: {}]   ;;  %s1891_s19 = inlined_call_operand.hbm [shape: f32[1,32], index: 19, kind: input, shape index: {}]   ;;  %s1892_s20 = inlined_call_operand.vmem [shape: f32[32,16], index: 20, kind: input, shape index: {}]   ;;  %s1893_s21 = inlined_call_operand.hbm [shape: f32[1,16], index: 21, kind: input, shape index: {}]   ;;  %s1894_s22 = inlined_call_operand.hbm [shape: f32[1,16], index: 22, kind: input, shape index: {}]   ;;  %s1895_s23 = inlined_call_operand.vmem [shape: f32[1,16], index: 23, kind: input, shape index: {}]   ;;  %s1896_s24 = inlined_call_operand.hbm [shape: f32[8,16], index: 24, kind: output, shape index: {0}]   ;;  %s1897_s25 = inlined_call_operand.hbm [shape: f32[8,8], index: 25, kind: output, shape index: {1}]   ;;  %s1898_s26 = inlined_call_operand.hbm [shape: f32[8,8], index: 26, kind: output, shape index: {2}]   ;;  %s1899_s27 = inlined_call_operand.hbm [shape: f32[8,8], index: 27, kind: output, shape index: {3}]  }
   0x1   :  { %1903 = sst [smem:[#allocation31_spill]] %s1872_s0 }
   0x2   :  { %1904 = sst [smem:[#allocation32_spill]] %s1873_s1 }
   0x3   :  { %1905 = sst [smem:[#allocation33_spill]] %s1874_s2 }
   0x4   :  { %1906 = sst [smem:[#allocation34_spill]] %s1875_s3 }
   0x5   :  { %1907 = sst [smem:[#allocation35_spill]] %s1876_s4 }
   0x6   :  { %1908 = sst [smem:[#allocation36_spill]] %s1877_s5 }
   0x7   :  { %1909 = sst [smem:[#allocation37_spill]] %s1878_s6 }
   0x8   :  { %1910 = sst [smem:[#allocation38_spill]] %s1879_s7 }
   0x9   :  { %1911 = sst [smem:[#allocation39_spill]] %s1880_s8 }
   0xa   :  { %1912 = sst [smem:[#allocation40_spill]] %s1881_s9 }
   0xb   :  { %1913 = sst [smem:[#allocation41_spill]] %s1882_s10 }
   0xc   :  { %1914 = sst [smem:[#allocation42_spill]] %s1883_s11 }
   0xd   :  { %33 = vsyncpa [#allocation3], 0 }
   0xe   :  { %34 = vsyncpa [#allocation6], 0 }
   0xf   :  { %35 = vsyncpa [#allocation9], 0 }
  0x10   :  { %36 = vsyncpa [#allocation12], 0 }
  0x11   :  { %37 = vsyncpa [#allocation15], 0 }
  0x12   :  { %38 = vsyncpa [#allocation4], 0 }
  0x13   :  { %39 = vsyncpa [#allocation19], 0 }
  0x14   :  { %40 = vsyncpa [#allocation22], 0  ;;  %s1421_s7 = smov [#allocation5]   ;;  %s1422_s8 = smov [#allocation8]  }
  0x15   :  { %s81_s4 = sshll.u32 %s1421_s7, 4  ;;  %s101_s30 = sshll.u32 %s1422_s8, 4  ;;  %s82_s4 = int_to_ptr.vmem [resolvable:$true] %s81_s4  ;;  %s102_s30 = int_to_ptr.vmem [resolvable:$true] %s101_s30 }
  0x16   :  { %s1119_s28 = scalar_lea.hbm %s1885_s13, 16 }
  0x17   :  { %p1120_p0 = scmp.ne.s32.totalorder %s1885_s13, %s1119_s28  ;;  %p1123_p1 = scmp.lt.u32.totalorder %s1119_s28, %s1885_s13 }
  0x19   :  { %p1125_p2 = pnand %p1123_p1, %p1120_p0 }
  0x1b   :  { %1128 = shalt.err (!%p1125_p2)
}
  0x1c   :  { %s1129_s6 = scalar_lea.vmem %s82_s4, 16  ;;  %s1133_s11 = scalar_lea.vmem %s82_s4, 32 }
  0x1d   :  { %p1130_p3 = scmp.ne.s32.totalorder %s82_s4, %s1129_s6  ;;  %p1134_p4 = scmp.lt.s32.totalorder %s82_s4, %s82_s4 }
  0x1e   :  { %p1135_p5 = scmp.lt.s32.totalorder %s1133_s11, %s1129_s6 }
  0x20   :  { %p1136_p6 = por %p1135_p5, %p1134_p4 }
  0x22   :  { %p1137_p7 = pnand %p1136_p6, %p1130_p3 }
  0x24   :  { %1140 = shalt.err (!%p1137_p7)
}
  0x25   :  { %84 = dma.hbm_to_vmem [thread:$0]  %s1885_s13, 16, %s82_s4, [#allocation6]  }
  0x26   :  { %s1141_s9 = scalar_lea.hbm %s1887_s15, 16 }
  0x27   :  { %p1142_p8 = scmp.ne.s32.totalorder %s1887_s15, %s1141_s9  ;;  %p1145_p9 = scmp.lt.u32.totalorder %s1141_s9, %s1887_s15 }
  0x29   :  { %p1147_p10 = pnand %p1145_p9, %p1142_p8 }
  0x2b   :  { %1150 = shalt.err (!%p1147_p10)
}
  0x2c   :  { %s1151_s29 = scalar_lea.vmem %s102_s30, 16  ;;  %s1155_s1 = scalar_lea.vmem %s102_s30, 32 }
  0x2d   :  { %p1152_p11 = scmp.ne.s32.totalorder %s102_s30, %s1151_s29  ;;  %p1156_p12 = scmp.lt.s32.totalorder %s102_s30, %s102_s30 }
  0x2e   :  { %p1157_p13 = scmp.lt.s32.totalorder %s1155_s1, %s1151_s29 }
  0x30   :  { %p1158_p0 = por %p1157_p13, %p1156_p12 }
  0x32   :  { %p1159_p1 = pnand %p1158_p0, %p1152_p11 }
  0x34   :  { %1162 = shalt.err (!%p1159_p1)
}
  0x35   :  { %104 = dma.hbm_to_vmem [thread:$0]  %s1887_s15, 16, %s102_s30, [#allocation9]  }
  0x36   :  { %s1423_s6 = smov [#allocation11]   ;;  %s1424_s2 = smov [#allocation14]  }
  0x37   :  { %s123_s11 = sshll.u32 %s1423_s6, 4  ;;  %s145_s3 = sshll.u32 %s1424_s2, 4  ;;  %s124_s11 = int_to_ptr.vmem [resolvable:$true] %s123_s11  ;;  %s146_s3 = int_to_ptr.vmem [resolvable:$true] %s145_s3 }
  0x38   :  { %s1163_s9 = scalar_lea.hbm %s1890_s18, 16 }
  0x39   :  { %p1164_p2 = scmp.ne.s32.totalorder %s1890_s18, %s1163_s9  ;;  %p1167_p3 = scmp.lt.u32.totalorder %s1163_s9, %s1890_s18 }
  0x3b   :  { %p1169_p4 = pnand %p1167_p3, %p1164_p2 }
  0x3d   :  { %1172 = shalt.err (!%p1169_p4)
}
  0x3e   :  { %s1173_s15 = scalar_lea.vmem %s124_s11, 16  ;;  %s1177_s30 = scalar_lea.vmem %s124_s11, 32 }
  0x3f   :  { %p1174_p5 = scmp.ne.s32.totalorder %s124_s11, %s1173_s15  ;;  %p1178_p6 = scmp.lt.s32.totalorder %s124_s11, %s124_s11 }
  0x40   :  { %p1179_p7 = scmp.lt.s32.totalorder %s1177_s30, %s1173_s15 }
  0x42   :  { %p1180_p8 = por %p1179_p7, %p1178_p6 }
  0x44   :  { %p1181_p9 = pnand %p1180_p8, %p1174_p5 }
  0x46   :  { %1184 = shalt.err (!%p1181_p9)
}
  0x47   :  { %126 = dma.hbm_to_vmem [thread:$0]  %s1890_s18, 16, %s124_s11, [#allocation12]  }
  0x48   :  { %s1185_s6 = scalar_lea.hbm %s1893_s21, 16 }
  0x49   :  { %p1186_p10 = scmp.ne.s32.totalorder %s1893_s21, %s1185_s6  ;;  %p1189_p11 = scmp.lt.u32.totalorder %s1185_s6, %s1893_s21 }
  0x4b   :  { %p1191_p12 = pnand %p1189_p11, %p1186_p10 }
  0x4d   :  { %1194 = shalt.err (!%p1191_p12)
}
  0x4e   :  { %s1195_s5 = scalar_lea.vmem %s146_s3, 16  ;;  %s1199_s28 = scalar_lea.vmem %s146_s3, 32 }
  0x4f   :  { %p1196_p13 = scmp.ne.s32.totalorder %s146_s3, %s1195_s5  ;;  %p1200_p0 = scmp.lt.s32.totalorder %s146_s3, %s146_s3 }
  0x50   :  { %p1201_p1 = scmp.lt.s32.totalorder %s1199_s28, %s1195_s5 }
  0x52   :  { %p1202_p2 = por %p1201_p1, %p1200_p0 }
  0x54   :  { %p1203_p3 = pnand %p1202_p2, %p1196_p13 }
  0x56   :  { %1206 = shalt.err (!%p1203_p3)
}
  0x57   :  { %148 = dma.hbm_to_vmem [thread:$0]  %s1893_s21, 16, %s146_s3, [#allocation15]  }
  0x58   :  { %s1425_s0 = smov [#allocation2]   ;;  %s1426_s15 = smov [#allocation7]  }
  0x59   :  { %s71_s10 = sshll.u32 %s1425_s0, 4  ;;  %s91_s30 = sshll.u32 %s1426_s15, 4  ;;  %s72_s10 = int_to_ptr.vmem [resolvable:$true] %s71_s10  ;;  %s92_s30 = int_to_ptr.vmem [resolvable:$true] %s91_s30 }
  0x5a   :  { %s1207_s13 = scalar_lea.hbm %s1884_s12, 128 }
  0x5b   :  { %p1208_p4 = scmp.ne.s32.totalorder %s1884_s12, %s1207_s13  ;;  %p1211_p5 = scmp.lt.u32.totalorder %s1207_s13, %s1884_s12 }
  0x5d   :  { %p1213_p6 = pnand %p1211_p5, %p1208_p4 }
  0x5f   :  { %1216 = shalt.err (!%p1213_p6)
}
  0x60   :  { %s1217_s21 = scalar_lea.vmem %s72_s10, 128  ;;  %p1222_p8 = scmp.lt.s32.totalorder %s72_s10, %s72_s10 }
  0x61   :  { %p1218_p7 = scmp.ne.s32.totalorder %s72_s10, %s1217_s21  ;;  %p1223_p9 = scmp.lt.s32.totalorder %s1217_s21, %s1217_s21 }
  0x63   :  { %p1224_p10 = por %p1223_p9, %p1222_p8 }
  0x65   :  { %p1225_p11 = pnand %p1224_p10, %p1218_p7 }
  0x67   :  { %1228 = shalt.err (!%p1225_p11)
}
  0x68   :  { %74 = dma.hbm_to_vmem [thread:$0]  %s1884_s12, 128, %s72_s10, [#allocation3]  }
  0x69   :  { %s1229_s28 = scalar_lea.hbm %s1886_s14, 16 }
  0x6a   :  { %p1230_p12 = scmp.ne.s32.totalorder %s1886_s14, %s1229_s28  ;;  %p1233_p13 = scmp.lt.u32.totalorder %s1229_s28, %s1886_s14 }
  0x6c   :  { %p1235_p0 = pnand %p1233_p13, %p1230_p12 }
  0x6e   :  { %1238 = shalt.err (!%p1235_p0)
}
  0x6f   :  { %s1239_s29 = scalar_lea.vmem %s92_s30, 16  ;;  %s1243_s1 = scalar_lea.vmem %s92_s30, 32 }
  0x70   :  { %p1240_p1 = scmp.ne.s32.totalorder %s92_s30, %s1239_s29  ;;  %p1244_p2 = scmp.lt.s32.totalorder %s92_s30, %s92_s30 }
  0x71   :  { %p1245_p3 = scmp.lt.s32.totalorder %s1243_s1, %s1239_s29 }
  0x73   :  { %p1246_p4 = por %p1245_p3, %p1244_p2 }
  0x75   :  { %p1247_p5 = pnand %p1246_p4, %p1240_p1 }
  0x77   :  { %1250 = shalt.err (!%p1247_p5)
}
  0x78   :  { %94 = dma.hbm_to_vmem [thread:$0]  %s1886_s14, 16, %s92_s30, [#allocation6]  }
  0x79   :  { %s1427_s13 = smov [#allocation10]   ;;  %s1428_s6 = smov [#allocation13]  }
  0x7a   :  { %s113_s4 = sshll.u32 %s1427_s13, 4  ;;  %s133_s2 = sshll.u32 %s1428_s6, 4  ;;  %s114_s4 = int_to_ptr.vmem [resolvable:$true] %s113_s4  ;;  %s134_s2 = int_to_ptr.vmem [resolvable:$true] %s133_s2 }
  0x7b   :  { %s1251_s3 = scalar_lea.hbm %s1889_s17, 16 }
  0x7c   :  { %p1252_p6 = scmp.ne.s32.totalorder %s1889_s17, %s1251_s3  ;;  %p1255_p7 = scmp.lt.u32.totalorder %s1251_s3, %s1889_s17 }
  0x7e   :  { %p1257_p8 = pnand %p1255_p7, %p1252_p6 }
  0x80   :  { %1260 = shalt.err (!%p1257_p8)
}
  0x81   :  { %s1261_s14 = scalar_lea.vmem %s114_s4, 16  ;;  %s1265_s30 = scalar_lea.vmem %s114_s4, 32 }
  0x82   :  { %p1262_p9 = scmp.ne.s32.totalorder %s114_s4, %s1261_s14  ;;  %p1266_p10 = scmp.lt.s32.totalorder %s114_s4, %s114_s4 }
  0x83   :  { %p1267_p11 = scmp.lt.s32.totalorder %s1265_s30, %s1261_s14 }
  0x85   :  { %p1268_p12 = por %p1267_p11, %p1266_p10 }
  0x87   :  { %p1269_p13 = pnand %p1268_p12, %p1262_p9 }
  0x89   :  { %1272 = shalt.err (!%p1269_p13)
}
  0x8a   :  { %116 = dma.hbm_to_vmem [thread:$0]  %s1889_s17, 16, %s114_s4, [#allocation9]  }
  0x8b   :  { %s1273_s29 = scalar_lea.hbm %s1891_s19, 16 }
  0x8c   :  { %p1274_p0 = scmp.ne.s32.totalorder %s1891_s19, %s1273_s29  ;;  %p1277_p1 = scmp.lt.u32.totalorder %s1273_s29, %s1891_s19 }
  0x8e   :  { %p1279_p2 = pnand %p1277_p1, %p1274_p0 }
  0x90   :  { %1282 = shalt.err (!%p1279_p2)
}
  0x91   :  { %s1283_s6 = scalar_lea.vmem %s134_s2, 16  ;;  %s1287_s7 = scalar_lea.vmem %s134_s2, 32 }
  0x92   :  { %p1284_p3 = scmp.ne.s32.totalorder %s134_s2, %s1283_s6  ;;  %p1288_p4 = scmp.lt.s32.totalorder %s134_s2, %s134_s2 }
  0x93   :  { %p1289_p5 = scmp.lt.s32.totalorder %s1287_s7, %s1283_s6 }
  0x95   :  { %p1290_p6 = por %p1289_p5, %p1288_p4 }
  0x97   :  { %p1291_p7 = pnand %p1290_p6, %p1284_p3 }
  0x99   :  { %1294 = shalt.err (!%p1291_p7)
}
  0x9a   :  { %136 = dma.hbm_to_vmem [thread:$0]  %s1891_s19, 16, %s134_s2, [#allocation12]  }
  0x9b   :  { %s1429_s21 = smov [#allocation16]   ;;  %s1295_s5 = scalar_lea.hbm %s1894_s22, 16 }
  0x9c   :  { %s155_s3 = sshll.u32 %s1429_s21, 4  ;;  %p1296_p8 = scmp.ne.s32.totalorder %s1894_s22, %s1295_s5  ;;  %s156_s3 = int_to_ptr.vmem [resolvable:$true] %s155_s3 }
  0x9d   :  { %p1299_p9 = scmp.lt.u32.totalorder %s1295_s5, %s1894_s22 }
  0x9f   :  { %p1301_p10 = pnand %p1299_p9, %p1296_p8 }
  0xa1   :  { %1304 = shalt.err (!%p1301_p10)
}
  0xa2   :  { %s1305_s11 = scalar_lea.vmem %s156_s3, 16  ;;  %s1309_s19 = scalar_lea.vmem %s156_s3, 32 }
  0xa3   :  { %p1306_p11 = scmp.ne.s32.totalorder %s156_s3, %s1305_s11  ;;  %p1310_p12 = scmp.lt.s32.totalorder %s156_s3, %s156_s3 }
  0xa4   :  { %p1311_p13 = scmp.lt.s32.totalorder %s1309_s19, %s1305_s11 }
  0xa6   :  { %p1312_p0 = por %p1311_p13, %p1310_p12 }
  0xa8   :  { %p1313_p1 = pnand %p1312_p0, %p1306_p11 }
  0xaa   :  { %1316 = shalt.err (!%p1313_p1)
}
  0xab   :  { %158 = dma.hbm_to_vmem [thread:$0]  %s1894_s22, 16, %s156_s3, [#allocation15]  }
  0xac   :  { %1405 = dma.done.wait [#allocation3], 128  }
  0xad   :  { %1406 = vsyncadd [#allocation3], 4294967168 }
  0xae   :  { %1407 = dma.done.wait [#allocation6], 32  }
  0xaf   :  { %1408 = vsyncadd [#allocation6], 4294967264 }
  0xb0   :  { %1409 = dma.done.wait [#allocation9], 32  }
  0xb1   :  { %1410 = vsyncadd [#allocation9], 4294967264 }
  0xb2   :  { %1411 = dma.done.wait [#allocation12], 32  }
  0xb3   :  { %1412 = vsyncadd [#allocation12], 4294967264 }
  0xb4   :  { %1413 = dma.done.wait [#allocation15], 32  }
  0xb5   :  { %1414 = vsyncadd [#allocation15], 4294967264  ;;  %v1430_v0 = vmov 0.0|0.0   ;;  %vm1431_vm0 = vmmov 0   ;;  %v1432_v1 = vmov 0.0   ;;  %s1915_s29 = sld [smem:[#allocation33_spill]]  ;;  %v301_v36 = vlaneseq }
  0xb6   :  { %1063 = vmatprep.subr.bf16.mxu0 %v1430_v0  ;;  %1011 = vmatprep.mubr.msk.f32.mxu0 %vm1431_vm0, %v1432_v1  ;;  %s1916_s6 = sld [smem:[#allocation31_spill]]  ;;  %vm200_vm1 = vcmask 130048   ;;  %s1917_s4 = sld [smem:[#allocation37_spill]]  ;;  %vm275_vm2 = vcmask 261120   ;;  %vm542_vm3 = vcmask 64512  }
  0xb7   :  { %1066 = vmatprep.subr.bf16.mxu1 %v1430_v0  ;;  %1022 = vmatprep.mubr.msk.f32.mxu1 %vm1431_vm0, %v1432_v1  ;;  %s1918_s18 = sld [smem:[#allocation34_spill]]  ;;  %v302_v37 = vshrl.u32 %v301_v36, 7  ;;  %s1919_s2 = sld [smem:[#allocation35_spill]] }
  0xb8   :  { %s1920_s15 = sld [smem:[#allocation36_spill]]  ;;  %s1921_s12 = sld [smem:[#allocation41_spill]] }
  0xb9   :  { %v1727_v39 = vsub.s32 0, %v302_v37  ;;  %s1922_s8 = sld [smem:[#allocation38_spill]]  ;;  %s1923_s28 = sld [smem:[#allocation39_spill]] }
  0xba   :  { %s1433_s0 = smov 120  }
  0xbb   :  { %v189_v2 = vld [vmem:[%s1915_s29] sm:$0xff]  ;;  %v190_v3 = vld [vmem:[%s1915_s29 + $0x8] sm:$0xff]  ;;  %s1926_s29 = sld [smem:[#allocation32_spill]] }
  0xbc   :  { %v1064_v4 = vpack.c.bf16 %v190_v3, %v189_v2  ;;  %v188_v5 = vld [vmem:[%s1916_s6] sm:$0xff]  ;;  %v315_v7 = vld [vmem:[%s1917_s4 + $0x8] sm:$0xff]  ;;  %v316_v9 = vld [vmem:[%s1917_s4 + $0x10] sm:$0xff] }
  0xbd   :  { %v314_v6 = vld [vmem:[%s1917_s4] sm:$0xff]  ;;  %v317_v10 = vld [vmem:[%s1917_s4 + $0x18] sm:$0xff] }
  0xbe   :  { %1065 = vmatpush3.bf16.msra.mxu0 %v1064_v4  ;;  %v1067_v8 = vpack.c.bf16 %v315_v7, %v314_v6  ;;  %v1070_v11 = vpack.c.bf16 %v317_v10, %v316_v9  ;;  %v970_v12 = vld [vmem:[%s1918_s18] ss:$0 sm:$0xff]  ;;  %v439_v50 = vld [vmem:[%s1921_s12 + $0x8] sm:$0xff]  ;;  %v440_v52 = vld [vmem:[%s1921_s12 + $0x10] sm:$0xff]  ;;  %s1924_s18 = sld [smem:[#allocation40_spill]] }
  0xbf   :  { %1072 = vmatprep.subr.bf16.mxu0 %v1430_v0  ;;  %v192_v38 = vld [vmem:[%s1919_s2] sm:$0x1]  ;;  %v441_v53 = vld [vmem:[%s1921_s12 + $0x18] sm:$0xff]  ;;  %s1925_s2 = sld [smem:[#allocation42_spill]] }
  0xc0   :  { %1068 = vmatpush3.bf16.msra.mxu1 %v1067_v8  ;;  %v193_v42 = vld [vmem:[%s1920_s15] sm:$0x1]  ;;  %v1076_v54 = vpack.c.bf16 %v441_v53, %v440_v52 }
  0xc1   :  { %1012 = vmatmul.mubr.msk.f32.vlgmr.msra.gmra.mrb[0].mxu0 %vm200_vm1, %v188_v5  ;;  %1069 = vmatprep.subr.bf16.mxu1 %v1430_v0  ;;  %v438_v49 = vld [vmem:[%s1921_s12] sm:$0xff] }
  0xc2   :  { %1033 = vmatprep.mubr.msk.f32.mxu0 %vm1431_vm0, %v1432_v1  ;;  %v1073_v51 = vpack.c.bf16 %v439_v50, %v438_v49  ;;  %v972_v55 = vld [vmem:[%s1922_s8] ss:$0 sm:$0xff] }
  0xc4   :  { %1071 = vmatpush3.bf16.msra.mxu1 %v1070_v11  ;;  %1074 = vmatpush3.bf16.msra.mxu0 %v1073_v51 }
  0xc5   :  { %1036 = vmatprep.subr.mxu1 %v1432_v1  ;;  %1075 = vmatprep.subr.bf16.mxu0 %v1430_v0 }
  0xc8   :  { %1077 = vmatpush3.bf16.msra.mxu0 %v1076_v54 }
  0xc9   :  { %1078 = vmatprep.subr.bf16.mxu0 %v1430_v0 }
 0x194   :  { %v270_v13 = vpop.f32.mrb[0].mxu0 }
 0x195   :  { %v271_v14 = vadd.f32 %v970_v12, %v270_v13  ;;  %v1013_v15 = vpop.f32.mrb[1].mxu0 }
 0x197   :  { %v274_v16 = vmax.f32 %v271_v14, 0.0 }
 0x199   :  { %v276_v17 = vsel %vm275_vm2, %v274_v16, 0.0 }
 0x19a   :  { %v277_v18 = vrot.slane %v276_v17, 4 }
 0x19c   :  { %v278_v19 = vadd.f32 %v277_v18, %v276_v17  ;;  %v319_v17 = vld [vmem:[%s1923_s28] sm:$0x1] }
 0x19e   :  { %v279_v20 = vrot.slane %v278_v19, 2 }
 0x1a0   :  { %v280_v21 = vadd.f32 %v279_v20, %v278_v19  ;;  %v320_v20 = vld [vmem:[%s1924_s18] sm:$0x1] }
 0x1a2   :  { %v281_v22 = vrot.slane %v280_v21, 1 }
 0x1a4   :  { %v282_v23 = vadd.f32 %v281_v22, %v280_v21 }
 0x1a6   :  { %v284_v24 = vmul.f32 0.125, %v282_v23 }
 0x1a8   :  { %v285_v25 = vsub.f32 %v274_v16, %v284_v24 }
 0x1aa   :  { %v286_v26 = vmul.f32 %v285_v25, %v285_v25 }
 0x1ac   :  { %v287_v27 = vsel %vm275_vm2, %v286_v26, 0.0 }
 0x1ad   :  { %v288_v28 = vrot.slane %v287_v27, 4 }
 0x1af   :  { %v289_v29 = vadd.f32 %v288_v28, %v287_v27  ;;  %v974_v27 = vld [vmem:[%s1925_s2] ss:$0 sm:$0xff] }
 0x1b1   :  { %v290_v30 = vrot.slane %v289_v29, 2 }
 0x1b3   :  { %v291_v31 = vadd.f32 %v290_v30, %v289_v29 }
 0x1b5   :  { %v292_v32 = vrot.slane %v291_v31, 1 }
 0x1b7   :  { %v293_v33 = vadd.f32 %v292_v32, %v291_v31 }
 0x1b9   :  { %v294_v34 = vmul.f32 0.125, %v293_v33  ;;  %v532_v33 = vld [vmem:[#allocation2] sm:$0xff] }
 0x1bb   :  { %v295_v35 = vadd.f32 1e-05, %v294_v34 }
 0x1bd   :  { %1107 = vrsqrt.f32 %v295_v35  ;;  %v522_v35 = vld [vmem:[%s1926_s29] sm:$0xff] }
 0x1c7   :  { %v1108_v40 = vpop.eup %1107 }
 0x1c8   :  { %v297_v41 = vmul.f32 %v1108_v40, %v192_v38 }
 0x1ca   :  { %v298_v43 = vmul.f32 %v297_v41, %v284_v24  ;;  %v304_v44 = vrot.slane %v297_v41, %v1727_v39  ;;  %v654_v41 = vld [vmem:[%s1888_s16] sm:$0xff] }
 0x1cc   :  { %v299_v45 = vsub.f32 %v193_v42, %v298_v43  ;;  %v306_v46 = vmul.f32 %v304_v44, %v274_v16  ;;  %v655_v42 = vld [vmem:[%s1888_s16 + $0x8] sm:$0xff]  ;;  %v656_v44 = vld [vmem:[%s1888_s16 + $0x10] sm:$0xff] }
 0x1cd   :  { %v1079_v43 = vpack.c.bf16 %v655_v42, %v654_v41 }
 0x1ce   :  { %v311_v47 = vrot.slane %v299_v45, %v1727_v39 }
 0x1d0   :  { %v313_v48 = vadd.f32 %v311_v47, %v306_v46  ;;  %v976_v46 = vld [vmem:[#allocation5] ss:$0 sm:$0xff] }
 0x1d2   :  { %1023 = vmatmul.mubr.msk.f32.vlgmr.msra.gmra.mrb[0].mxu1 %vm275_vm2, %v313_v48 }
 0x1d3   :  { %1038 = vmatprep.mubr.msk.f32.mxu1 %vm1431_vm0, %v1432_v1  ;;  %1037 = vmatpush3.msra.mxu1 %v532_v33 }
 0x1d4   :  { %1084 = vmatprep.subr.bf16.mxu1 %v1430_v0 }
 0x2a5   :  { %v396_v56 = vpop.f32.mrb[0].mxu1 }
 0x2a6   :  { %v397_v57 = vadd.f32 %v972_v55, %v396_v56  ;;  %v1024_v58 = vpop.f32.mrb[1].mxu1 }
 0x2a8   :  { %v400_v59 = vmax.f32 %v397_v57, 0.0 }
 0x2aa   :  { %v401_v60 = vsel %vm275_vm2, %v400_v59, 0.0 }
 0x2ab   :  { %v402_v61 = vrot.slane %v401_v60, 4 }
 0x2ad   :  { %v403_v62 = vadd.f32 %v402_v61, %v401_v60 }
 0x2af   :  { %v404_v63 = vrot.slane %v403_v62, 2 }
 0x2b1   :  { %v405_v2 = vadd.f32 %v404_v63, %v403_v62 }
 0x2b3   :  { %v406_v3 = vrot.slane %v405_v2, 1 }
 0x2b5   :  { %v407_v4 = vadd.f32 %v406_v3, %v405_v2 }
 0x2b7   :  { %v408_v5 = vmul.f32 0.125, %v407_v4 }
 0x2b9   :  { %v409_v6 = vsub.f32 %v400_v59, %v408_v5 }
 0x2bb   :  { %v410_v7 = vmul.f32 %v409_v6, %v409_v6 }
 0x2bd   :  { %v411_v8 = vsel %vm275_vm2, %v410_v7, 0.0 }
 0x2be   :  { %v412_v9 = vrot.slane %v411_v8, 4 }
 0x2c0   :  { %v413_v10 = vadd.f32 %v412_v9, %v411_v8  ;;  %v534_v8 = vld [vmem:[#allocation7] sm:$0x1] }
 0x2c2   :  { %v414_v11 = vrot.slane %v413_v10, 2 }
 0x2c4   :  { %v415_v12 = vadd.f32 %v414_v11, %v413_v10  ;;  %v535_v11 = vld [vmem:[#allocation8] sm:$0x1] }
 0x2c6   :  { %v416_v13 = vrot.slane %v415_v12, 1 }
 0x2c8   :  { %v417_v14 = vadd.f32 %v416_v13, %v415_v12 }
 0x2ca   :  { %v418_v15 = vmul.f32 0.125, %v417_v14 }
 0x2cc   :  { %v419_v16 = vadd.f32 1e-05, %v418_v15 }
 0x2ce   :  { %1109 = vrsqrt.f32 %v419_v16 }
 0x2d8   :  { %v1110_v18 = vpop.eup %1109 }
 0x2d9   :  { %v421_v19 = vmul.f32 %v1110_v18, %v319_v17  ;;  %v778_v18 = vld [vmem:[%s1892_s20] sm:$0xff] }
 0x2db   :  { %v422_v21 = vmul.f32 %v421_v19, %v408_v5  ;;  %v428_v22 = vrot.slane %v421_v19, %v1727_v39  ;;  %v779_v19 = vld [vmem:[%s1892_s20 + $0x8] sm:$0xff] }
 0x2dd   :  { %v423_v23 = vsub.f32 %v320_v20, %v422_v21  ;;  %v430_v24 = vmul.f32 %v428_v22, %v400_v59  ;;  %v1085_v20 = vpack.c.bf16 %v779_v19, %v778_v18  ;;  %v780_v21 = vld [vmem:[%s1892_s20 + $0x10] sm:$0xff]  ;;  %v781_v22 = vld [vmem:[%s1892_s20 + $0x18] sm:$0xff]  ;;  %s1434_s20 = smov [#allocation18]  }
 0x2de   :  { %s926_s30 = sshll.u32 %s1434_s20, 4  ;;  %s927_s30 = int_to_ptr.vmem [resolvable:$true] %s926_s30 }
 0x2df   :  { %v435_v25 = vrot.slane %v423_v23, %v1727_v39  ;;  %v1088_v23 = vpack.c.bf16 %v781_v22, %v780_v21  ;;  %s1317_s18 = scalar_lea.vmem %s927_s30, 128  ;;  %p1322_p3 = scmp.lt.s32.totalorder %s927_s30, %s927_s30 }
 0x2e0   :  { %p1318_p2 = scmp.ne.s32.totalorder %s927_s30, %s1317_s18  ;;  %p1323_p4 = scmp.lt.s32.totalorder %s1317_s18, %s1317_s18 }
 0x2e1   :  { %v437_v26 = vadd.f32 %v435_v25, %v430_v24  ;;  %v978_v24 = vld [vmem:[#allocation10] ss:$0 sm:$0xff] }
 0x2e2   :  { %p1324_p5 = por %p1323_p4, %p1322_p3 }
 0x2e3   :  { %1034 = vmatmul.mubr.msk.f32.vlgmr.msra.gmra.mrb[2].mxu0 %vm275_vm2, %v437_v26 }
 0x2e4   :  { %1049 = vmatprep.mubr.msk.f32.mxu0 %vm1431_vm0, %v1432_v1  ;;  %1080 = vmatpush3.bf16.msra.mxu0 %v1079_v43  ;;  %p1325_p6 = pnand %p1324_p5, %p1318_p2 }
 0x2e5   :  { %1081 = vmatprep.subr.bf16.mxu0 %v1430_v0 }
 0x3b6   :  { %v518_v28 = vpop.f32.mrb[2].mxu0 }
 0x3b7   :  { %v519_v29 = vadd.f32 %v974_v27, %v518_v28  ;;  %v1035_v30 = vpop.f32.mrb[3].mxu0 }
 0x3b9   :  { %v523_v31 = vmul.f32 0.5, %v519_v29  ;;  %904 = vst.msk [vmem:[#allocation20] sm:$0xff] %vm542_vm3, %v519_v29 }
 0x3bb   :  { %v524_v32 = vmul.f32 1.442695, %v523_v31 }
 0x3bd   :  { %1111 = vpow2.f32 %v524_v32 }
 0x3c7   :  { %v1112_v34 = vpop.eup %1111 }
 0x3c8   :  { %527 = vrot.lane.b32.xlu0 %v1112_v34, %s1433_s0 }
 0x3cc   :  { %906 = vrot.lane.b32.xlu0 %v519_v29, %s1433_s0 }
 0x43a   :  { %v528_v36 = vpop.permute.xlu0 %527 }
 0x43b   :  { %v530_v37 = vmul.f32 %v528_v36, %v522_v35 }
 0x43d   :  { %v531_v38 = vadd.f32 %v530_v37, %v519_v29 }
 0x43e   :  { %v907_v40 = vpop.permute.xlu0 %906 }
 0x43f   :  { %1039 = vmatmul.mubr.msk.f32.vlgmr.msra.gmra.mrb[2].mxu1 %vm542_vm3, %v531_v38  ;;  %903 = vst.msk [vmem:[#allocation18] sm:$0xff] %vm542_vm3, %v531_v38  ;;  %909 = vst.msk [vmem:[#allocation21] sm:$0xff] %vm542_vm3, %v907_v40 }
 0x440   :  { %1060 = vmatprep.mubr.msk.f32.mxu1 %vm1431_vm0, %v1432_v1  ;;  %v657_v1 = vld [vmem:[%s1888_s16 + $0x18] sm:$0xff]  ;;  %1086 = vmatpush3.bf16.msra.mxu1 %v1085_v20 }
 0x441   :  { %v1082_v45 = vpack.c.bf16 %v657_v1, %v656_v44  ;;  %1087 = vmatprep.subr.bf16.mxu1 %v1430_v0 }
 0x443   :  { %1083 = vmatpush3.bf16.msra.mxu0 %v1082_v45 }
 0x444   :  { %1089 = vmatpush3.bf16.msra.mxu1 %v1088_v23 }
 0x512   :  { %v612_v47 = vpop.f32.mrb[2].mxu1 }
 0x513   :  { %v613_v48 = vadd.f32 %v976_v46, %v612_v47  ;;  %v1040_v49 = vpop.f32.mrb[3].mxu1  ;;  %v659_v47 = vld [vmem:[#allocation11] sm:$0x1] }
 0x515   :  { %v616_v50 = vmax.f32 %v613_v48, 0.0 }
 0x517   :  { %v617_v51 = vsel %vm275_vm2, %v616_v50, 0.0 }
 0x518   :  { %v618_v52 = vrot.slane %v617_v51, 4 }
 0x51a   :  { %v619_v53 = vadd.f32 %v618_v52, %v617_v51 }
 0x51c   :  { %v620_v54 = vrot.slane %v619_v53, 2 }
 0x51e   :  { %v621_v55 = vadd.f32 %v620_v54, %v619_v53 }
 0x520   :  { %v622_v56 = vrot.slane %v621_v55, 1 }
 0x522   :  { %v623_v57 = vadd.f32 %v622_v56, %v621_v55 }
 0x524   :  { %v624_v58 = vmul.f32 0.125, %v623_v57 }
 0x526   :  { %v625_v59 = vsub.f32 %v616_v50, %v624_v58 }
 0x528   :  { %v626_v60 = vmul.f32 %v625_v59, %v625_v59 }
 0x52a   :  { %v627_v61 = vsel %vm275_vm2, %v626_v60, 0.0 }
 0x52b   :  { %v628_v62 = vrot.slane %v627_v61, 4 }
 0x52d   :  { %v629_v63 = vadd.f32 %v628_v62, %v627_v61 }
 0x52f   :  { %v630_v2 = vrot.slane %v629_v63, 2 }
 0x531   :  { %v631_v3 = vadd.f32 %v630_v2, %v629_v63 }
 0x533   :  { %v632_v4 = vrot.slane %v631_v3, 1 }
 0x535   :  { %v633_v5 = vadd.f32 %v632_v4, %v631_v3 }
 0x537   :  { %v634_v6 = vmul.f32 0.125, %v633_v5 }
 0x539   :  { %v635_v7 = vadd.f32 1e-05, %v634_v6 }
 0x53b   :  { %1113 = vrsqrt.f32 %v635_v7 }
 0x545   :  { %v1114_v9 = vpop.eup %1113 }
 0x546   :  { %v637_v10 = vmul.f32 %v1114_v9, %v534_v8 }
 0x548   :  { %v638_v12 = vmul.f32 %v637_v10, %v624_v58  ;;  %v644_v13 = vrot.slane %v637_v10, %v1727_v39 }
 0x54a   :  { %v639_v14 = vsub.f32 %v535_v11, %v638_v12  ;;  %v646_v15 = vmul.f32 %v644_v13, %v616_v50  ;;  %v660_v50 = vld [vmem:[#allocation13] sm:$0x1] }
 0x54c   :  { %v651_v16 = vrot.slane %v639_v14, %v1727_v39 }
 0x54e   :  { %v653_v17 = vadd.f32 %v651_v16, %v646_v15 }
 0x550   :  { %1050 = vmatmul.mubr.msk.f32.vlgmr.msra.gmra.mrb[4].mxu0 %vm275_vm2, %v653_v17 }
 0x623   :  { %v736_v25 = vpop.f32.mrb[4].mxu0 }
 0x624   :  { %v737_v26 = vadd.f32 %v978_v24, %v736_v25  ;;  %v1051_v27 = vpop.f32.mrb[5].mxu0 }
 0x626   :  { %v740_v28 = vmax.f32 %v737_v26, 0.0 }
 0x628   :  { %v741_v29 = vsel %vm275_vm2, %v740_v28, 0.0 }
 0x629   :  { %v742_v30 = vrot.slane %v741_v29, 4 }
 0x62b   :  { %v743_v31 = vadd.f32 %v742_v30, %v741_v29 }
 0x62d   :  { %v744_v0 = vrot.slane %v743_v31, 2 }
 0x62f   :  { %v745_v32 = vadd.f32 %v744_v0, %v743_v31 }
 0x631   :  { %v746_v33 = vrot.slane %v745_v32, 1 }
 0x633   :  { %v747_v34 = vadd.f32 %v746_v33, %v745_v32 }
 0x635   :  { %v748_v35 = vmul.f32 0.125, %v747_v34 }
 0x637   :  { %v749_v36 = vsub.f32 %v740_v28, %v748_v35 }
 0x639   :  { %v750_v37 = vmul.f32 %v749_v36, %v749_v36 }
 0x63b   :  { %v751_v38 = vsel %vm275_vm2, %v750_v37, 0.0 }
 0x63c   :  { %v752_v40 = vrot.slane %v751_v38, 4 }
 0x63e   :  { %v753_v41 = vadd.f32 %v752_v40, %v751_v38 }
 0x640   :  { %v754_v42 = vrot.slane %v753_v41, 2 }
 0x642   :  { %v755_v43 = vadd.f32 %v754_v42, %v753_v41 }
 0x644   :  { %v756_v44 = vrot.slane %v755_v43, 1 }
 0x646   :  { %v757_v1 = vadd.f32 %v756_v44, %v755_v43 }
 0x648   :  { %v758_v45 = vmul.f32 0.125, %v757_v1 }
 0x64a   :  { %v759_v46 = vadd.f32 1e-05, %v758_v45 }
 0x64c   :  { %1115 = vrsqrt.f32 %v759_v46 }
 0x656   :  { %v1116_v48 = vpop.eup %1115 }
 0x657   :  { %v761_v49 = vmul.f32 %v1116_v48, %v659_v47 }
 0x659   :  { %v762_v51 = vmul.f32 %v761_v49, %v748_v35  ;;  %v768_v52 = vrot.slane %v761_v49, %v1727_v39 }
 0x65b   :  { %v763_v53 = vsub.f32 %v660_v50, %v762_v51  ;;  %v770_v54 = vmul.f32 %v768_v52, %v740_v28 }
 0x65d   :  { %v775_v55 = vrot.slane %v763_v53, %v1727_v39 }
 0x65f   :  { %v777_v56 = vadd.f32 %v775_v55, %v770_v54 }
 0x661   :  { %1061 = vmatmul.mubr.msk.f32.vlgmr.msra.gmra.mrb[4].mxu1 %vm275_vm2, %v777_v56 }
 0x662   :  { %1328 = shalt.err (!%p1325_p6)
}
 0x663   :  { %s1329_s2 = scalar_lea.hbm %s1897_s25, 128 }
 0x664   :  { %p1330_p7 = scmp.ne.s32.totalorder %s1897_s25, %s1329_s2  ;;  %p1333_p8 = scmp.lt.u32.totalorder %s1329_s2, %s1897_s25 }
 0x666   :  { %p1335_p9 = pnand %p1333_p8, %p1330_p7 }
 0x668   :  { %1338 = shalt.err (!%p1335_p9)
}
 0x669   :  { %929 = dma.vmem_to_hbm [thread:$0]  %s927_s30, 128, %s1897_s25, [#allocation19]  }
 0x66a   :  { %s1435_s10 = smov [#allocation20]  }
 0x66b   :  { %s936_s13 = sshll.u32 %s1435_s10, 4  ;;  %s937_s13 = int_to_ptr.vmem [resolvable:$true] %s936_s13 }
 0x66c   :  { %s1339_s6 = scalar_lea.vmem %s937_s13, 128  ;;  %p1344_p11 = scmp.lt.s32.totalorder %s937_s13, %s937_s13 }
 0x66d   :  { %p1340_p10 = scmp.ne.s32.totalorder %s937_s13, %s1339_s6  ;;  %p1345_p12 = scmp.lt.s32.totalorder %s1339_s6, %s1339_s6 }
 0x66f   :  { %p1346_p13 = por %p1345_p12, %p1344_p11 }
 0x671   :  { %p1347_p0 = pnand %p1346_p13, %p1340_p10 }
 0x673   :  { %1350 = shalt.err (!%p1347_p0)
}
 0x674   :  { %s1351_s4 = scalar_lea.hbm %s1898_s26, 128 }
 0x675   :  { %p1352_p1 = scmp.ne.s32.totalorder %s1898_s26, %s1351_s4  ;;  %p1355_p2 = scmp.lt.u32.totalorder %s1351_s4, %s1898_s26 }
 0x677   :  { %p1357_p3 = pnand %p1355_p2, %p1352_p1 }
 0x679   :  { %1360 = shalt.err (!%p1357_p3)
}
 0x67a   :  { %939 = dma.vmem_to_hbm [thread:$0]  %s937_s13, 128, %s1898_s26, [#allocation19]  }
 0x67b   :  { %s1436_s5 = smov [#allocation21]  }
 0x67c   :  { %s946_s28 = sshll.u32 %s1436_s5, 4  ;;  %s947_s28 = int_to_ptr.vmem [resolvable:$true] %s946_s28 }
 0x67d   :  { %s1361_s14 = scalar_lea.vmem %s947_s28, 128  ;;  %p1366_p5 = scmp.lt.s32.totalorder %s947_s28, %s947_s28 }
 0x67e   :  { %p1362_p4 = scmp.ne.s32.totalorder %s947_s28, %s1361_s14  ;;  %p1367_p6 = scmp.lt.s32.totalorder %s1361_s14, %s1361_s14 }
 0x680   :  { %p1368_p7 = por %p1367_p6, %p1366_p5 }
 0x682   :  { %p1369_p8 = pnand %p1368_p7, %p1362_p4 }
 0x684   :  { %1372 = shalt.err (!%p1369_p8)
}
 0x685   :  { %s1373_s18 = scalar_lea.hbm %s1899_s27, 128 }
 0x686   :  { %p1374_p9 = scmp.ne.s32.totalorder %s1899_s27, %s1373_s18  ;;  %p1377_p10 = scmp.lt.u32.totalorder %s1373_s18, %s1899_s27 }
 0x688   :  { %p1379_p11 = pnand %p1377_p10, %p1374_p9 }
 0x68a   :  { %1382 = shalt.err (!%p1379_p11)
}
 0x68b   :  { %949 = dma.vmem_to_hbm [thread:$0]  %s947_s28, 128, %s1899_s27, [#allocation22]   ;;  %v980_v57 = vld [vmem:[#allocation14] ss:$0 sm:$0xff]  ;;  %v783_v19 = vld [vmem:[#allocation16] sm:$0x1] }
 0x68c   :  { %v784_v22 = vld [vmem:[%s1895_s23] sm:$0x1]  ;;  %s1437_s29 = smov [#allocation17]  }
 0x68d   :  { %s916_s1 = sshll.u32 %s1437_s29, 4  ;;  %s917_s1 = int_to_ptr.vmem [resolvable:$true] %s916_s1 }
 0x68e   :  { %s1383_s12 = scalar_lea.vmem %s917_s1, 128  ;;  %p1388_p13 = scmp.lt.s32.totalorder %s917_s1, %s917_s1 }
 0x68f   :  { %p1384_p12 = scmp.ne.s32.totalorder %s917_s1, %s1383_s12  ;;  %p1389_p0 = scmp.lt.s32.totalorder %s1383_s12, %s1383_s12 }
 0x691   :  { %p1390_p1 = por %p1389_p0, %p1388_p13 }
 0x693   :  { %p1391_p2 = pnand %p1390_p1, %p1384_p12 }
 0x734   :  { %v860_v58 = vpop.f32.mrb[4].mxu1 }
 0x735   :  { %v861_v59 = vadd.f32 %v980_v57, %v860_v58  ;;  %v1062_v60 = vpop.f32.mrb[5].mxu1 }
 0x737   :  { %v864_v61 = vmax.f32 %v861_v59, 0.0 }
 0x739   :  { %v865_v62 = vsel %vm200_vm1, %v864_v61, 0.0 }
 0x73a   :  { %v866_v63 = vrot.slane %v865_v62, 4 }
 0x73c   :  { %v867_v2 = vadd.f32 %v866_v63, %v865_v62 }
 0x73e   :  { %v868_v3 = vrot.slane %v867_v2, 2 }
 0x740   :  { %v869_v4 = vadd.f32 %v868_v3, %v867_v2 }
 0x742   :  { %v870_v5 = vrot.slane %v869_v4, 1 }
 0x744   :  { %v871_v6 = vadd.f32 %v870_v5, %v869_v4 }
 0x746   :  { %v872_v7 = vmul.f32 0.125, %v871_v6 }
 0x748   :  { %v873_v8 = vsub.f32 %v864_v61, %v872_v7 }
 0x74a   :  { %v874_v9 = vmul.f32 %v873_v8, %v873_v8 }
 0x74c   :  { %v875_v10 = vsel %vm200_vm1, %v874_v9, 0.0 }
 0x74d   :  { %v876_v11 = vrot.slane %v875_v10, 4 }
 0x74f   :  { %v877_v12 = vadd.f32 %v876_v11, %v875_v10 }
 0x751   :  { %v878_v13 = vrot.slane %v877_v12, 2 }
 0x753   :  { %v879_v14 = vadd.f32 %v878_v13, %v877_v12 }
 0x755   :  { %v880_v15 = vrot.slane %v879_v14, 1 }
 0x757   :  { %v881_v16 = vadd.f32 %v880_v15, %v879_v14 }
 0x759   :  { %v882_v17 = vmul.f32 0.125, %v881_v16 }
 0x75b   :  { %v883_v18 = vadd.f32 1e-05, %v882_v17 }
 0x75d   :  { %1117 = vrsqrt.f32 %v883_v18 }
 0x767   :  { %v1118_v20 = vpop.eup %1117 }
 0x768   :  { %v885_v21 = vmul.f32 %v1118_v20, %v783_v19 }
 0x76a   :  { %v886_v23 = vmul.f32 %v885_v21, %v872_v7  ;;  %v892_v24 = vrot.slane %v885_v21, %v1727_v39 }
 0x76c   :  { %v887_v25 = vsub.f32 %v784_v22, %v886_v23  ;;  %v894_v26 = vmul.f32 %v892_v24, %v864_v61 }
 0x76e   :  { %v899_v27 = vrot.slane %v887_v25, %v1727_v39 }
 0x770   :  { %v901_v28 = vadd.f32 %v899_v27, %v894_v26 }
 0x772   :  { %902 = vst.msk [vmem:[#allocation17] sm:$0xff] %vm200_vm1, %v901_v28 }
 0x773   :  { %1394 = shalt.err (!%p1391_p2)
}
 0x774   :  { %s1395_s13 = scalar_lea.hbm %s1896_s24, 128 }
 0x775   :  { %p1396_p3 = scmp.ne.s32.totalorder %s1896_s24, %s1395_s13  ;;  %p1399_p4 = scmp.lt.u32.totalorder %s1395_s13, %s1896_s24 }
 0x777   :  { %p1401_p5 = pnand %p1399_p4, %p1396_p3 }
 0x779   :  { %1404 = shalt.err (!%p1401_p5)
}
 0x77a   :  { %919 = dma.vmem_to_hbm [thread:$0]  %s917_s1, 128, %s1896_s24, [#allocation4]  }
 0x77b   :  { %1415 = dma.done.wait [#allocation4], 128  }
 0x77c   :  { %1416 = vsyncadd [#allocation4], 4294967168 }
 0x77d   :  { %1417 = dma.done.wait [#allocation19], 256  }
 0x77e   :  { %1418 = vsyncadd [#allocation19], 4294967040 }
 0x77f   :  { %1419 = dma.done.wait [#allocation22], 128  }
 0x780   :  { %1420 = vsyncadd [#allocation22], 4294967168 }
 0x781   :  { %962 = vsyncpa [#allocation3], 1 }
 0x782   :  { %963 = vsyncpa [#allocation6], 1 }
 0x783   :  { %964 = vsyncpa [#allocation9], 1 }
 0x784   :  { %965 = vsyncpa [#allocation12], 1 }
 0x785   :  { %966 = vsyncpa [#allocation15], 1 }
 0x786   :  { %967 = vsyncpa [#allocation4], 1 }
 0x787   :  { %968 = vsyncpa [#allocation19], 1 }
 0x788   :  { %969 = vsyncpa [#allocation22], 1 }

</bundles_post_ra>
